<compile_context>
chip_gen: v5e
topology: v5e:2x2
jax: 0.10.0
libtpu: 0.0.40
codegen_flags: <defaults>
</compile_context>

<pallas_src>
import jax
import jax.numpy as jnp
from jax.experimental import pallas as pl
from jax.experimental.pallas import tpu as pltpu


def _relu_kernel(x_ref, o_ref):
    # Elementwise max(0, x) on the VPU for the current VMEM tile.
    o_ref[...] = jnp.maximum(x_ref[...], jnp.zeros((), dtype=x_ref.dtype))


def relu_pallas(x, *, target_block_bytes: int = 2 * 1024 * 1024,
                max_lane_width: int = 1024, inplace: bool = False):
    """Element-wise ReLU for an arbitrary-shaped array via a tiled Pallas kernel."""
    orig_shape = x.shape
    dtype = x.dtype
    n = x.size
    if n == 0:
        return x

    itemsize = jnp.dtype(dtype).itemsize
    # Sublane packing: f32 -> 8, bf16 -> 16, int8/fp8 -> 32 rows per vreg.
    sub_mult = max(8, (32 // (8 * itemsize)) * 8)

    # Pick the slab width W: wide (lane-dense, multiple of 128) for large
    # inputs, shrink for small inputs to avoid padding waste.
    W = max(128, max_lane_width)
    while W > 128 and n < W * sub_mult:
        W //= 2
    row_bytes = W * itemsize

    # Row count padded only to the sublane multiple (not to a full tile).
    rows = pl.cdiv(n, W)
    rows_pad = pl.cdiv(rows, sub_mult) * sub_mult

    # Tile rows: aim for ~target_block_bytes per block, clamp to the data size,
    # keep a multiple of the sublane packing factor.
    tile_rows = (target_block_bytes // row_bytes) // sub_mult * sub_mult
    tile_rows = max(sub_mult, min(rows_pad, tile_rows))
    # Make the grid exact (at most one tile of padding, only for ragged sizes).
    rows_pad = pl.cdiv(rows_pad, tile_rows) * tile_rows

    n_pad = rows_pad * W
    flat = x.reshape(-1)
    needs_pad = n_pad != n
    if needs_pad:
        flat = jnp.pad(flat, (0, n_pad - n))   # single pad, ReLU-invariant zeros
    slab = flat.reshape(rows_pad, W)

    grid = (rows_pad // tile_rows,)
    out = pl.pallas_call(
        _relu_kernel,
        out_shape=jax.ShapeDtypeStruct((rows_pad, W), dtype),
        grid_spec=pltpu.PrefetchScalarGridSpec(
            num_scalar_prefetch=0,
            grid=grid,
            in_specs=[pl.BlockSpec((tile_rows, W), lambda i: (i, 0))],
            out_specs=pl.BlockSpec((tile_rows, W), lambda i: (i, 0)),
        ),
        compiler_params=pltpu.CompilerParams(
            dimension_semantics=("parallel",),
        ),
        # nn.ReLU(inplace=True): reuse the input buffer for the output.
        input_output_aliases=({0: 0} if inplace else {}),
    )(slab)

    if needs_pad:
        return out.reshape(-1)[:n].reshape(orig_shape)
    return out.reshape(orig_shape)


if __name__ == "__main__":
    key = jax.random.PRNGKey(0)
    # NCHW input, like torch: batch=2, channels=4, spatial=16x16
    x = jax.random.normal(key, (2, 4, 16, 16), dtype=jnp.float32)

    y = relu_pallas(x)
    jax.block_until_ready(y)

    # Sanity check against pure-JAX reference.
    y_ref = jnp.maximum(x, 0.0)
    assert y.shape == x.shape and y.dtype == x.dtype
    assert jnp.allclose(y, y_ref), "mismatch vs reference"

    # Also exercise a ragged size (forces the single-pad path).
    x2 = jax.random.normal(jax.random.PRNGKey(0), (3, 5, 7), dtype=jnp.float32)
    y2 = relu_pallas(x2)
    jax.block_until_ready(y2)
    assert jnp.allclose(y2, jnp.maximum(x2, 0.0)), "mismatch vs reference (ragged)"

    print("KERNEL_OK")
</pallas_src>

<mosaic_0001>
module attributes {stable_mosaic.version = 11 : i64} {
  func.func @_relu_kernel(%arg0: i32, %arg1: memref<8x256xf32, #tpu.memory_space<vmem>>, %arg2: memref<8x256xf32, #tpu.memory_space<vmem>>) attributes {dimension_semantics = [#tpu.dimension_semantics<parallel>], iteration_bounds = array<i64: 1>, scalar_prefetch = 0 : i64, scratch_operands = 0 : i64, tpu.core_type = #tpu.core_type<tc>, window_params = [{transform_indices = @transform_0, window_bounds = array<i64: 8, 256>}, {transform_indices = @transform_1, window_bounds = array<i64: 8, 256>}]} {
    %c0 = arith.constant 0 : index
    %c0_0 = arith.constant 0 : index
    %0 = vector.load %arg1[%c0, %c0_0] : memref<8x256xf32, #tpu.memory_space<vmem>>, vector<8x256xf32>
    %cst = arith.constant 0.000000e+00 : f32
    %1 = vector.broadcast %cst : f32 to vector<8x256xf32>
    %2 = arith.maximumf %0, %1 : vector<8x256xf32>
    %c0_1 = arith.constant 0 : index
    %c0_2 = arith.constant 0 : index
    %3 = vector.load %arg2[%c0_1, %c0_2] : memref<8x256xf32, #tpu.memory_space<vmem>>, vector<8x256xf32>
    tpu.vector_store %arg2[%c0_1, %c0_2], %2 {strides = array<i32>} : memref<8x256xf32, #tpu.memory_space<vmem>>, vector<8x256xf32>,
    return
  }
  func.func @transform_0(%arg0: i32) -> (i32, i32) {
    %c0_i32 = arith.constant 0 : i32
    %c0_i32_0 = arith.constant 0 : i32
    return %arg0, %c0_i32 : i32, i32
  }
  func.func @transform_1(%arg0: i32) -> (i32, i32) {
    %c0_i32 = arith.constant 0 : i32
    %c0_i32_0 = arith.constant 0 : i32
    return %arg0, %c0_i32 : i32, i32
  }
}

</mosaic_0001>

<bundles_post_ra>
// kernel: tpu_custom_call.1
= control target key start
LH: loop header
LB: loop body
LE: loop exit
PB: predicated region body
PF: predicated region fallthrough
CT: control target
= control target key end

     0   :  { %6 = vsyncpa [#allocation3], 0  ;;  %s118_s0 = inlined_call_operand.hbm [shape: f32[8,256], index: 0, kind: input, shape index: {}]   ;;  %s119_s1 = inlined_call_operand.hbm [shape: f32[8,256], index: 1, kind: output, shape index: {}]  }
   0x1   :  { %7 = vsyncpa [#allocation4], 0  ;;  %s13_s8 = sshll.u32 %s118_s0, 4  ;;  %s100_s9 = smov [#allocation2]   ;;  %s14_s8 = int_to_ptr.hbm [resolvable:$true] %s13_s8 }
   0x2   :  { %s15_s10 = sshll.u32 %s100_s9, 4  ;;  %s16_s10 = int_to_ptr.vmem [resolvable:$true] %s15_s10 }
   0x3   :  { %18 = dma.hbm_to_vmem [thread:$0]  %s14_s8, 256, %s16_s10, [#allocation3]  }
   0x4   :  { %96 = dma.done.wait [#allocation3], 256  }
   0x5   :  { %97 = vsyncadd [#allocation3], 4294967040  ;;  %s101_s11 = smov [#allocation5]   ;;  %s36_s15 = sshll.u32 %s119_s1, 4  ;;  %v23_v0 = vld [vmem:[#allocation2] sm:$0xff]  ;;  %v24_v1 = vld [vmem:[#allocation2 + $0x8] sm:$0xff]  ;;  %s37_s15 = int_to_ptr.hbm [resolvable:$true] %s36_s15 }
   0x6   :  { %s34_s12 = sshll.u32 %s101_s11, 4  ;;  %v25_v2 = vmax.f32 %v23_v0, 0.0  ;;  %v26_v3 = vmax.f32 %v24_v1, 0.0  ;;  %s35_s12 = int_to_ptr.vmem [resolvable:$true] %s34_s12 }
   0x8   :  { %27 = vst [vmem:[#allocation5] sm:$0xff] %v25_v2 }
   0x9   :  { %28 = vst [vmem:[#allocation5 + $0x8] sm:$0xff] %v26_v3 }
   0xa   :  { %39 = dma.vmem_to_hbm [thread:$0]  %s35_s12, 256, %s37_s15, [#allocation4]  }
   0xb   :  { %98 = dma.done.wait [#allocation4], 256  }
   0xc   :  { %99 = vsyncadd [#allocation4], 4294967040 }
   0xd   :  { %44 = vsyncpa [#allocation3], 1 }
   0xe   :  { %45 = vsyncpa [#allocation4], 1 }

</bundles_post_ra>
